<compile_context>
chip_gen: v6e
topology: v6e:2x2x1
jax: 0.10.0
libtpu: 0.0.40
codegen_flags: <defaults>
</compile_context>

<pallas_src>
import functools

import jax
import jax.numpy as jnp
from jax.experimental import pallas as pl
from jax.experimental.pallas import tpu as pltpu

W0 = 30.0  # Omega_0 from the SIREN paper (module default)
C = 6      # unused in forward (kept for parity with the PyTorch module)

_LANE = 128
_DEFAULT_BLOCK_ROWS = 2048  # 2048 x 128 x f32 = 1 MiB per block (4 MiB w/ dbl-buffered in+out)


def _sine_kernel(w0, x_ref, o_ref):
    # Elementwise hot path: VPU multiply + EUP sine. Compute in f32, store in
    # the original dtype.
    x = x_ref[...].astype(jnp.float32)
    o_ref[...] = jnp.sin(w0 * x).astype(o_ref.dtype)


def _sublane_multiple(dtype) -> int:
    # Minimum packed-tile sublane count: 8 (32-bit), 16 (16-bit), 32 (8-bit).
    itemsize = jnp.dtype(dtype).itemsize
    return 8 * max(1, 4 // itemsize)


def sine(x: jax.Array, w0: float = W0, *, block_rows: int = _DEFAULT_BLOCK_ROWS) -> jax.Array:
    """Apply y = sin(w0 * x) elementwise via a Pallas TPU kernel.

    Works for any input shape / floating dtype; returns same shape/dtype.
    """
    orig_shape = x.shape
    dtype = x.dtype
    n = x.size
    itemsize = jnp.dtype(dtype).itemsize

    # Flatten to a lane-dense 2-D slab (rows, 128).
    flat = x.reshape(-1)
    rows = pl.cdiv(n, _LANE)
    padded = rows * _LANE != n
    if padded:
        # Only for sizes not divisible by 128; pads < 128 elements.
        flat = jnp.concatenate([flat, jnp.zeros((rows * _LANE - n,), dtype=dtype)])
    slab = flat.reshape(rows, _LANE)

    # Pick the tile height: tall blocks, rounded to the dtype's packed-tile
    # sublane multiple. If everything fits in one block, use the full array
    # (block == full dims is always a legal block shape).
    mult = _sublane_multiple(dtype)
    br = (min(block_rows, rows) // mult) * mult
    if br == 0 or br >= rows:
        br = rows  # single block covering the whole slab
    grid = (pl.cdiv(rows, br),)  # ragged last block is masked by Pallas

    cost = pl.CostEstimate(
        flops=n,
        transcendentals=n,
        bytes_accessed=2 * n * itemsize,
    )

    out = pl.pallas_call(
        functools.partial(_sine_kernel, float(w0)),  # python float -> literal, no captured const
        out_shape=jax.ShapeDtypeStruct((rows, _LANE), dtype),
        grid_spec=pltpu.PrefetchScalarGridSpec(
            num_scalar_prefetch=0,
            grid=grid,
            in_specs=[pl.BlockSpec((br, _LANE), lambda i: (i, 0))],
            out_specs=pl.BlockSpec((br, _LANE), lambda i: (i, 0)),
        ),
        compiler_params=pltpu.CompilerParams(
            dimension_semantics=("parallel",),
        ),
        cost_estimate=cost,
    )(slab)

    out = out.reshape(-1)
    if padded:
        out = out[:n]
    return out.reshape(orig_shape)


if __name__ == "__main__":
    key = jax.random.PRNGKey(0)

    # NCHW input, small shape consistent with typical usage (numel % 128 == 0
    # -> zero-copy fast path).
    x = jax.random.normal(key, (2, 4, 16, 16), dtype=jnp.float32)
    y = jax.block_until_ready(sine(x))
    y_ref = jnp.sin(W0 * x)
    assert y.shape == x.shape and y.dtype == x.dtype
    assert jnp.allclose(y, y_ref, atol=1e-5, rtol=1e-5)

    # Also exercise the non-128-aligned (padded, ragged-block) path.
    x2 = jax.random.normal(jax.random.PRNGKey(1), (3, 5), dtype=jnp.float32)
    y2 = jax.block_until_ready(sine(x2))
    assert y2.shape == x2.shape and y2.dtype == x2.dtype
    assert jnp.allclose(y2, jnp.sin(W0 * x2), atol=1e-5, rtol=1e-5)

    print("KERNEL_OK")
</pallas_src>

<mosaic_0001>
module attributes {stable_mosaic.version = 11 : i64} {
  func.func @_sine_kernel(%arg0: i32, %arg1: memref<16x128xf32, #tpu.memory_space<vmem>>, %arg2: memref<16x128xf32, #tpu.memory_space<vmem>>) attributes {dimension_semantics = [#tpu.dimension_semantics<parallel>], iteration_bounds = array<i64: 1>, scalar_prefetch = 0 : i64, scratch_operands = 0 : i64, tpu.core_type = #tpu.core_type<tc>, window_params = [{transform_indices = @transform_0, window_bounds = array<i64: 16, 128>}, {transform_indices = @transform_1, window_bounds = array<i64: 16, 128>}]} {
    %c0 = arith.constant 0 : index
    %c0_0 = arith.constant 0 : index
    %0 = vector.load %arg1[%c0, %c0_0] : memref<16x128xf32, #tpu.memory_space<vmem>>, vector<16x128xf32>
    %cst = arith.constant 3.000000e+01 : f32
    %1 = vector.broadcast %cst : f32 to vector<16x128xf32>
    %2 = arith.mulf %1, %0 : vector<16x128xf32>
    %3 = math.sin %2 : vector<16x128xf32>
    %c0_1 = arith.constant 0 : index
    %c0_2 = arith.constant 0 : index
    %4 = vector.load %arg2[%c0_1, %c0_2] : memref<16x128xf32, #tpu.memory_space<vmem>>, vector<16x128xf32>
    tpu.vector_store %arg2[%c0_1, %c0_2], %3 {strides = array<i32>} : memref<16x128xf32, #tpu.memory_space<vmem>>, vector<16x128xf32>,
    return
  }
  func.func @transform_0(%arg0: i32) -> (i32, i32) {
    %c0_i32 = arith.constant 0 : i32
    %c0_i32_0 = arith.constant 0 : i32
    return %arg0, %c0_i32 : i32, i32
  }
  func.func @transform_1(%arg0: i32) -> (i32, i32) {
    %c0_i32 = arith.constant 0 : i32
    %c0_i32_0 = arith.constant 0 : i32
    return %arg0, %c0_i32 : i32, i32
  }
}

</mosaic_0001>

<bundles_post_ra>
// kernel: tpu_custom_call.1
= control target key start
LH: loop header
LB: loop body
LE: loop exit
PB: predicated region body
PF: predicated region fallthrough
CT: control target
= control target key end

     0   :  { %6 = vsyncpa [#allocation3], 0  ;;  %s442_s0 = inlined_call_operand.hbm [shape: f32[16,128], index: 0, kind: input, shape index: {}]   ;;  %s443_s1 = inlined_call_operand.hbm [shape: f32[16,128], index: 1, kind: output, shape index: {}]  }
   0x1   :  { %7 = vsyncpa [#allocation4], 0  ;;  %s332_s6 = smov [#allocation2]  }
   0x2   :  { %s13_s7 = sshll.u32 %s332_s6, 4  ;;  %s14_s7 = int_to_ptr.vmem [resolvable:$true] %s13_s7 }
   0x3   :  { %s296_s8 = scalar_lea.vmem %s14_s7, 256  ;;  %p301_p1 = scmp.lt.s32.totalorder %s14_s7, %s14_s7 }
   0x4   :  { %p297_p0 = scmp.ne.s32.totalorder %s14_s7, %s296_s8  ;;  %p302_p2 = scmp.lt.s32.totalorder %s296_s8, %s296_s8 }
   0x6   :  { %p303_p3 = por %p302_p2, %p301_p1 }
   0x8   :  { %p304_p4 = pnand %p303_p3, %p297_p0 }
   0xa   :  { %307 = shalt.err (!%p304_p4)
}
   0xb   :  { %s333_s9 = smov 128   ;;  %s334_s10 = smov 8  }
   0xc   :  { %19 = dma.hbm_to_vmem [thread:$0]  %s442_s0, 256, %s14_s7, [#allocation3], %s333_s9, %s333_s9, %s334_s10  }
   0xd   :  { %328 = dma.done.wait [#allocation3], 256  }
   0xe   :  { %329 = vsyncadd [#allocation3], 4294967040  ;;  %v23_v0 = vld [vmem:[#allocation2] sm:$0xff]  ;;  %v24_v1 = vld [vmem:[#allocation2 + $0x8] sm:$0xff]  ;;  %v335_v26 = vmov 683565275  }
   0xf   :  { %v358_v2 = vmul.f32 30.0, %v23_v0  ;;  %v360_v3 = vmul.f32 30.0, %v24_v1  ;;  %v336_v28 = vmov 2475754826   ;;  %v337_v30 = vmov 2131351028  }
  0x10   :  { %v338_v32 = vmov 2102212464   ;;  %v339_v34 = vmov 920167782   ;;  %v340_v42 = vmov 1326507024  }
  0x11   :  { %v27_v4 = vand.u32 2147483647, %v358_v2  ;;  %v30_v5 = vand.u32 2139095040, %v358_v2  ;;  %v131_v6 = vand.u32 2147483647, %v360_v3  ;;  %v134_v7 = vand.u32 2139095040, %v360_v3 }
  0x12   :  { %vm29_vm14 = vcmp.lt.s32.totalorder %v358_v2, 0  ;;  %s341_s0 = smov [#allocation5]  }
  0x13   :  { %v31_v8 = vshrl.u32 %v30_v5, 23  ;;  %v34_v9 = vand.u32 8388607, %v27_v4  ;;  %v135_v10 = vshrl.u32 %v134_v7, 23  ;;  %v138_v11 = vand.u32 8388607, %v131_v6 }
  0x14   :  { %vm421_vm15 = vcmp.le.f32.partialorder %v27_v4, 0.7853982  ;;  %s242_s13 = sshll.u32 %s341_s0, 4  ;;  %s243_s13 = int_to_ptr.vmem [resolvable:$true] %s242_s13 }
  0x15   :  { %v254_v12 = vadd.s32 4294967169, %v31_v8  ;;  %v258_v13 = vadd.s32 4294967169, %v135_v10  ;;  %v35_v15 = vor.u32 8388608, %v34_v9  ;;  %v139_v16 = vor.u32 8388608, %v138_v11  ;;  %s308_s14 = scalar_lea.vmem %s243_s13, 256  ;;  %p313_p6 = scmp.lt.s32.totalorder %s243_s13, %s243_s13 }
  0x16   :  { %p309_p5 = scmp.ne.s32.totalorder %s243_s13, %s308_s14  ;;  %p314_p7 = scmp.lt.s32.totalorder %s308_s14, %s308_s14 }
  0x17   :  { %v37_v14 = vadd.s32 1, %v254_v12  ;;  %v141_v17 = vadd.s32 1, %v258_v13  ;;  %v370_v22 = vshll.u32 %v35_v15, 8  ;;  %v372_v24 = vshll.u32 %v139_v16, 8 }
  0x18   :  { %p315_p8 = por %p314_p7, %p313_p6 }
  0x19   :  { %vm38_vm0 = vcmp.gt.s32.totalorder %v37_v14, 0  ;;  %vm142_vm1 = vcmp.gt.s32.totalorder %v141_v17, 0 }
  0x1a   :  { %v39_v18 = vsel %vm38_vm0, %v37_v14, 0  ;;  %v143_v21 = vsel %vm142_vm1, %v141_v17, 0  ;;  %vm133_vm0 = vcmp.lt.s32.totalorder %v360_v3, 0  ;;  %vm132_vm1 = vcmp.le.f32.partialorder %v131_v6, 0.7853982  ;;  %p316_p9 = pnand %p315_p8, %p309_p5 }
  0x1b   :  { %v40_v19 = vshrl.u32 %v39_v18, 5  ;;  %v41_v20 = vand.u32 31, %v39_v18  ;;  %v145_v23 = vand.u32 31, %v143_v21  ;;  %v374_v36 = vshrl.u32 %v143_v21, 5 }
  0x1d   :  { %v42_v25 = vsub.s32 32, %v41_v20  ;;  %v44_v27 = vshll.u32 %v335_v26, %v41_v20  ;;  %v47_v29 = vshll.u32 %v336_v28, %v41_v20  ;;  %v50_v31 = vshll.u32 %v337_v30, %v41_v20 }
  0x1e   :  { %v53_v33 = vshll.u32 %v338_v32, %v41_v20  ;;  %v56_v35 = vshll.u32 %v339_v34, %v41_v20  ;;  %vm59_vm2 = vcmp.lt.s32.totalorder %v40_v19, 1  ;;  %vm60_vm3 = vcmp.lt.s32.totalorder %v40_v19, 2 }
  0x1f   :  { %v43_v37 = vshrl.u32 %v335_v26, %v42_v25  ;;  %v45_v38 = vshrl.u32 %v336_v28, %v42_v25  ;;  %v48_v39 = vshrl.u32 %v337_v30, %v42_v25  ;;  %v51_v40 = vshrl.u32 %v338_v32, %v42_v25 }
  0x20   :  { %v54_v41 = vshrl.u32 %v339_v34, %v42_v25  ;;  %v57_v43 = vshrl.u32 %v340_v42, %v42_v25  ;;  %vm62_vm4 = vcmp.lt.s32.totalorder %v40_v19, 4  ;;  %v146_v47 = vsub.s32 32, %v145_v23 }
  0x21   :  { %v46_v44 = vor.u32 %v45_v38, %v44_v27  ;;  %v49_v45 = vor.u32 %v48_v39, %v47_v29  ;;  %v52_v46 = vor.u32 %v51_v40, %v50_v31  ;;  %vm61_vm5 = vcmp.lt.s32.totalorder %v40_v19, 3 }
  0x22   :  { %v55_v48 = vor.u32 %v54_v41, %v53_v33  ;;  %v58_v49 = vor.u32 %v57_v43, %v56_v35  ;;  %v148_v50 = vshll.u32 %v335_v26, %v145_v23  ;;  %v151_v58 = vshll.u32 %v336_v28, %v145_v23 }
  0x23   :  { %v63_v51 = vsel %vm59_vm2, %v43_v37, %v46_v44  ;;  %v64_v52 = vsel %vm62_vm4, %v52_v46, 2102212464  ;;  %v67_v53 = vsel %vm59_vm2, %v46_v44, %v49_v45  ;;  %v71_v54 = vsel %vm59_vm2, %v49_v45, %v52_v46 }
  0x24   :  { %v65_v55 = vsel %vm61_vm5, %v49_v45, %v64_v52  ;;  %v68_v56 = vsel %vm62_vm4, %v55_v48, 920167782  ;;  %v72_v57 = vsel %vm62_vm4, %v58_v49, 1326507024  ;;  %v147_v61 = vshrl.u32 %v335_v26, %v146_v47 }
  0x25   :  { %v69_v59 = vsel %vm61_vm5, %v52_v46, %v68_v56  ;;  %v73_v60 = vsel %vm61_vm5, %v55_v48, %v72_v57  ;;  %v149_v62 = vshrl.u32 %v336_v28, %v146_v47  ;;  %v66_v63 = vsel %vm60_vm3, %v63_v51, %v65_v55 }
  0x26   :  { %v70_v0 = vsel %vm60_vm3, %v67_v53, %v69_v59  ;;  %v74_v1 = vsel %vm60_vm3, %v71_v54, %v73_v60  ;;  %v152_v5 = vshrl.u32 %v337_v30, %v146_v47  ;;  %v154_v13 = vshll.u32 %v337_v30, %v145_v23 }
  0x27   :  { %v383_v7 = vmul.u32.u64.low %v370_v22, %v74_v1  ;;  %v384_v8 = vmul.u32.u64.high %v370_v22, %v74_v1, %v383_v7  ;;  %v387_v9 = vmul.u32.u64.low %v370_v22, %v70_v0  ;;  %v388_v10 = vmul.u32.u64.high %v370_v22, %v70_v0, %v387_v9 }
  0x28   :  { %v150_v11 = vor.u32 %v149_v62, %v148_v50  ;;  %v153_v12 = vor.u32 %v152_v5, %v151_v58  ;;  %v155_v14 = vshrl.u32 %v338_v32, %v146_v47  ;;  %v157_v15 = vshll.u32 %v338_v32, %v145_v23 }
  0x29   :  { %v158_v16 = vshrl.u32 %v339_v34, %v146_v47  ;;  %v160_v17 = vshll.u32 %v339_v34, %v145_v23  ;;  %v161_v18 = vshrl.u32 %v340_v42, %v146_v47  ;;  %v82_v19 = vmul.u32 %v370_v22, %v66_v63 }
  0x2a   :  { %v156_v20 = vor.u32 %v155_v14, %v154_v13  ;;  %vm163_vm6 = vcmp.lt.s32.totalorder %v374_v36, 1  ;;  %vm164_vm7 = vcmp.lt.s32.totalorder %v374_v36, 2  ;;  %vm84_vm8 = vc.u32 %v384_v8, %v387_v9 }
  0x2b   :  { %v85_v21 = vadd.s32 1, %v388_v10  ;;  %v159_v25 = vor.u32 %v158_v16, %v157_v15  ;;  %vm165_vm9 = vcmp.lt.s32.totalorder %v374_v36, 3  ;;  %v162_v26 = vor.u32 %v161_v18, %v160_v17 }
  0x2c   :  { %vm166_vm10 = vcmp.lt.s32.totalorder %v374_v36, 4  ;;  %v167_v27 = vsel %vm163_vm6, %v147_v61, %v150_v11  ;;  %v171_v23 = vsel %vm163_vm6, %v150_v11, %v153_v12  ;;  %v175_v30 = vsel %vm163_vm6, %v153_v12, %v156_v20 }
  0x2d   :  { %v86_v28 = vsel %vm84_vm8, %v85_v21, %v388_v10  ;;  %v168_v22 = vsel %vm166_vm10, %v156_v20, 2102212464  ;;  %v172_v29 = vsel %vm166_vm10, %v159_v25, 920167782  ;;  %v176_v34 = vsel %vm166_vm10, %v162_v26, 1326507024 }
  0x2e   :  { %v87_v31 = vadd.s32 %v86_v28, %v82_v19  ;;  %v169_v32 = vsel %vm165_vm9, %v153_v12, %v168_v22  ;;  %v173_v33 = vsel %vm165_vm9, %v156_v20, %v172_v29  ;;  %v177_v38 = vsel %vm165_vm9, %v159_v25, %v176_v34 }
  0x2f   :  { %v170_v35 = vsel %vm164_vm7, %v167_v27, %v169_v32  ;;  %v174_v37 = vsel %vm164_vm7, %v171_v23, %v173_v33  ;;  %v178_v40 = vsel %vm164_vm7, %v175_v30, %v177_v38  ;;  %v83_v59 = vadd.s32 %v387_v9, %v384_v8 }
  0x30   :  { %v88_v39 = vadd.s32 536870912, %v87_v31  ;;  %v405_v41 = vmul.u32.u64.low %v372_v24, %v174_v37  ;;  %v406_v42 = vmul.u32.u64.high %v372_v24, %v174_v37, %v405_v41  ;;  %v186_v46 = vmul.u32 %v372_v24, %v170_v35 }
  0x31   :  { %v409_v43 = vmul.u32.u64.low %v372_v24, %v178_v40  ;;  %v410_v44 = vmul.u32.u64.high %v372_v24, %v178_v40, %v409_v43  ;;  %vm119_vm5 = vweird.f32 %v358_v2  ;;  %vm223_vm9 = vweird.f32 %v360_v3 }
  0x32   :  { %v89_v45 = vshrl.u32 %v88_v39, 30  ;;  %v189_v48 = vadd.s32 1, %v406_v42 }
  0x33   :  { %vm188_vm11 = vc.u32 %v410_v44, %v405_v41  ;;  %v187_v15 = vadd.s32 %v405_v41, %v410_v44 }
  0x34   :  { %v90_v47 = vshll.u32 %v89_v45, 30  ;;  %v190_v36 = vsel %vm188_vm11, %v189_v48, %v406_v42  ;;  %v113_v20 = vsub.s32 4, %v89_v45 }
  0x35   :  { %v191_v50 = vadd.s32 %v190_v36, %v186_v46 }
  0x36   :  { %v91_v49 = vsub.s32 %v87_v31, %v90_v47  ;;  %v114_v29 = vsel %vm29_vm14, %v113_v20, %v89_v45 }
  0x37   :  { %v192_v52 = vadd.s32 536870912, %v191_v50  ;;  %v116_v4 = vsel %vm421_vm15, 0, %v114_v29 }
  0x38   :  { %v93_v51 = vsub.s32 0, %v91_v49  ;;  %v120_v37 = vadd.s32 3, %v116_v4 }
  0x39   :  { %v193_v54 = vshrl.u32 %v192_v52, 30 }
  0x3a   :  { %v255_v53 = vmin.u32 %v93_v51, %v91_v49  ;;  %v121_v42 = vand.u32 3, %v120_v37 }
  0x3b   :  { %v194_v56 = vshll.u32 %v193_v54, 30  ;;  %v217_v35 = vsub.s32 4, %v193_v54 }
  0x3c   :  { %v95_v55 = vclz %v255_v53  ;;  %vm126_vm2 = vcmp.eq.s32.totalorder %v121_v42, 2  ;;  %vm123_vm3 = vcmp.eq.s32.totalorder %v121_v42, 0  ;;  %vm122_vm4 = vcmp.lt.s32.totalorder %v121_v42, 2 }
  0x3d   :  { %v195_v58 = vsub.s32 %v191_v50, %v194_v56  ;;  %v218_v40 = vsel %vm133_vm0, %v217_v35, %v193_v54 }
  0x3e   :  { %v256_v57 = vadd.s32 4294967294, %v95_v55  ;;  %v220_v43 = vsel %vm132_vm1, 0, %v218_v40 }
  0x3f   :  { %v197_v60 = vsub.s32 0, %v195_v58  ;;  %v224_v47 = vadd.s32 3, %v220_v43 }
  0x40   :  { %vm257_vm12 = vcmp.lt.s32.totalorder %v256_v57, 0 }
  0x41   :  { %v98_v24 = vsel %vm257_vm12, 0, %v256_v57  ;;  %v259_v0 = vmin.u32 %v197_v60, %v195_v58  ;;  %v225_v50 = vand.u32 3, %v224_v47 }
  0x42   :  { %v99_v61 = vsub.s32 32, %v98_v24  ;;  %v100_v62 = vshll.u32 %v91_v49, %v98_v24  ;;  %v103_v63 = vsub.s32 4294967266, %v98_v24 }
  0x43   :  { %v199_v7 = vclz %v259_v0  ;;  %vm230_vm6 = vcmp.eq.s32.totalorder %v225_v50, 2  ;;  %vm227_vm7 = vcmp.eq.s32.totalorder %v225_v50, 0  ;;  %vm226_vm8 = vcmp.lt.s32.totalorder %v225_v50, 2 }
  0x44   :  { %v101_v1 = vshrl.u32 %v83_v59, %v99_v61  ;;  %v104_v5 = vadd.s32 127, %v103_v63 }
  0x45   :  { %v260_v12 = vadd.s32 4294967294, %v199_v7 }
  0x46   :  { %v102_v10 = vor.u32 %v101_v1, %v100_v62  ;;  %v105_v11 = vshll.u32 %v104_v5, 23 }
  0x47   :  { %vm261_vm13 = vcmp.lt.s32.totalorder %v260_v12, 0 }
  0x48   :  { %v106_v13 = vor.u32 4788187, %v105_v11  ;;  %v109_v14 = vcvt.s32.f32 %v102_v10  ;;  %v202_v8 = vsel %vm261_vm13, 0, %v260_v12 }
  0x49   :  { %v203_v9 = vsub.s32 32, %v202_v8  ;;  %v204_v17 = vshll.u32 %v195_v58, %v202_v8  ;;  %v207_v18 = vsub.s32 4294967266, %v202_v8 }
  0x4a   :  { %v107_v16 = vand.u32 2147483647, %v106_v13 }
  0x4b   :  { %v205_v21 = vshrl.u32 %v187_v15, %v203_v9  ;;  %v208_v25 = vadd.s32 127, %v207_v18 }
  0x4c   :  { %v110_v19 = vmul.f32 %v109_v14, %v107_v16 }
  0x4d   :  { %v206_v23 = vor.u32 %v205_v21, %v204_v17  ;;  %v209_v28 = vshll.u32 %v208_v25, 23 }
  0x4e   :  { %v111_v27 = vxor.u32 2147483648, %v110_v19 }
  0x4f   :  { %v210_v31 = vor.u32 4788187, %v209_v28  ;;  %v213_v32 = vcvt.s32.f32 %v206_v23 }
  0x50   :  { %v112_v22 = vsel %vm29_vm14, %v111_v27, %v110_v19 }
  0x51   :  { %v115_v30 = vsel %vm421_vm15, %v358_v2, %v112_v22  ;;  %v211_v33 = vand.u32 2147483647, %v210_v31 }
  0x52   :  { %280 = vcosq.f32 %v115_v30 }
  0x53   :  { %282 = vsinq.f32 %v115_v30  ;;  %v214_v34 = vmul.f32 %v213_v32, %v211_v33 }
  0x55   :  { %v215_v38 = vxor.u32 2147483648, %v214_v34 }
  0x57   :  { %v216_v39 = vsel %vm133_vm0, %v215_v38, %v214_v34 }
  0x58   :  { %v219_v41 = vsel %vm132_vm1, %v360_v3, %v216_v39 }
  0x59   :  { %284 = vcosq.f32 %v219_v41 }
  0x5a   :  { %286 = vsinq.f32 %v219_v41 }
  0x5f   :  { %v281_v44 = vpop.eup %280 }
  0x60   :  { %v283_v45 = vpop.eup %282  ;;  %v127_v46 = vxor.u32 2147483648, %v281_v44 }
  0x61   :  { %v124_v48 = vxor.u32 2147483648, %v283_v45 }
  0x62   :  { %v128_v6 = vsel %vm126_vm2, %v127_v46, %v283_v45 }
  0x63   :  { %v125_v49 = vsel %vm123_vm3, %v281_v44, %v124_v48 }
  0x64   :  { %v129_v36 = vsel %vm122_vm4, %v125_v49, %v128_v6 }
  0x65   :  { %v130_v51 = vsel %vm119_vm5, nan, %v129_v36 }
  0x66   :  { %235 = vst [vmem:[#allocation5] sm:$0xff] %v130_v51  ;;  %v285_v52 = vpop.eup %284 }
  0x67   :  { %v287_v53 = vpop.eup %286  ;;  %v231_v54 = vxor.u32 2147483648, %v285_v52 }
  0x68   :  { %v228_v55 = vxor.u32 2147483648, %v287_v53 }
  0x69   :  { %v232_v56 = vsel %vm230_vm6, %v231_v54, %v287_v53 }
  0x6a   :  { %v229_v57 = vsel %vm227_vm7, %v285_v52, %v228_v55 }
  0x6b   :  { %v233_v2 = vsel %vm226_vm8, %v229_v57, %v232_v56 }
  0x6c   :  { %v234_v58 = vsel %vm223_vm9, nan, %v233_v2 }
  0x6d   :  { %236 = vst [vmem:[#allocation5 + $0x8] sm:$0xff] %v234_v58 }
  0x6e   :  { %319 = shalt.err (!%p316_p9)
}
  0x6f   :  { %248 = dma.vmem_to_hbm [thread:$0]  %s243_s13, 256, %s443_s1, [#allocation4], %s333_s9, %s333_s9, %s334_s10  }
  0x70   :  { %330 = dma.done.wait [#allocation4], 256  }
  0x71   :  { %331 = vsyncadd [#allocation4], 4294967040 }
  0x72   :  { %252 = vsyncpa [#allocation3], 1 }
  0x73   :  { %253 = vsyncpa [#allocation4], 1 }

</bundles_post_ra>
